<compile_context>
chip_gen: v6e
topology: v6e:2x2x1
jax: 0.10.0
libtpu: 0.0.40
codegen_flags: <defaults>
</compile_context>

<pallas_src>
import math

import jax
import jax.numpy as jnp
from jax.experimental import pallas as pl
from jax.experimental.pallas import tpu as pltpu

_LANE = 128
_SUBLANE = 8


def _copy_kernel(x_ref, o_ref):
    # Pure tile copy; the kernel is entirely DMA-bound.
    o_ref[...] = x_ref[...]


def _choose_block(rows, lanes, itemsize, tile_budget_bytes):
    """Pick a (br, bd) tile: lane-dense, ~tile_budget bytes, VMEM-portable."""
    # Lane (last) dim: as wide as the budget allows; multiple of 128 or full.
    max_lanes = max(_LANE, tile_budget_bytes // (_SUBLANE * itemsize))
    if lanes <= max_lanes:
        bd = lanes
    else:
        bd = (max_lanes // _LANE) * _LANE
    # Row (second-to-last) dim: fill the remaining budget; multiple of 8 or full.
    max_rows = max(_SUBLANE, tile_budget_bytes // (bd * itemsize))
    if rows <= max_rows:
        br = rows
    else:
        br = (max_rows // _SUBLANE) * _SUBLANE
    return br, bd


def collapse_forward(x, num_dims=3, side='back',
                     tile_budget_bytes=2 * 1024 * 1024):
    """COLLAPSE forward: [*lead, *tail(num_dims)] -> [*lead, prod(tail)]."""
    if side != 'back':
        # TODO(synk): the PyTorch 'front' branch is broken in the original
        # (outdims=[-1] is immediately overwritten); only side='back' is implemented.
        raise NotImplementedError("only side='back' is implemented")
    assert 0 < num_dims <= x.ndim

    lead_shape = x.shape[: x.ndim - num_dims]
    collapsed = math.prod(x.shape[x.ndim - num_dims:])
    out_shape = (*lead_shape, collapsed)

    rows = math.prod(lead_shape) if lead_shape else 1
    lanes = collapsed
    x2d = x.reshape(rows, lanes)  # zero-cost view; keeps lanes as the fast axis

    br, bd = _choose_block(rows, lanes, x.dtype.itemsize, tile_budget_bytes)
    grid = (pl.cdiv(rows, br), pl.cdiv(lanes, bd))

    out2d = pl.pallas_call(
        _copy_kernel,
        out_shape=jax.ShapeDtypeStruct((rows, lanes), x.dtype),
        grid_spec=pltpu.PrefetchScalarGridSpec(
            num_scalar_prefetch=0,
            grid=grid,
            in_specs=[pl.BlockSpec((br, bd), lambda i, j: (i, j))],
            out_specs=pl.BlockSpec((br, bd), lambda i, j: (i, j)),
        ),
        compiler_params=pltpu.CompilerParams(
            dimension_semantics=("parallel", "parallel"),
        ),
    )(x2d)

    return out2d.reshape(out_shape)  # zero-cost view back to [*lead, D]


def collapse_reference(x, num_dims=3):
    lead_shape = x.shape[: x.ndim - num_dims]
    return x.reshape(*lead_shape, -1)


if __name__ == "__main__":
    key = jax.random.PRNGKey(0)
    N, T, C, H, W = 2, 8, 4, 16, 16
    x = jax.random.normal(key, (N, T, C, H, W), dtype=jnp.float32)

    y = collapse_forward(x, num_dims=3, side='back')
    y = jax.block_until_ready(y)

    y_ref = collapse_reference(x, num_dims=3)
    assert y.shape == (N, T, C * H * W)
    assert jnp.array_equal(y, y_ref)

    print("KERNEL_OK")
</pallas_src>

<mosaic_0001>
module attributes {stable_mosaic.version = 11 : i64} {
  func.func @_copy_kernel(%arg0: i32, %arg1: i32, %arg2: memref<16x1024xf32, #tpu.memory_space<vmem>>, %arg3: memref<16x1024xf32, #tpu.memory_space<vmem>>) attributes {dimension_semantics = [#tpu.dimension_semantics<parallel>, #tpu.dimension_semantics<parallel>], iteration_bounds = array<i64: 1, 1>, scalar_prefetch = 0 : i64, scratch_operands = 0 : i64, tpu.core_type = #tpu.core_type<tc>, window_params = [{transform_indices = @transform_0, window_bounds = array<i64: 16, 1024>}, {transform_indices = @transform_1, window_bounds = array<i64: 16, 1024>}]} {
    %c0 = arith.constant 0 : index
    %c0_0 = arith.constant 0 : index
    %0 = vector.load %arg2[%c0, %c0_0] : memref<16x1024xf32, #tpu.memory_space<vmem>>, vector<16x1024xf32>
    %c0_1 = arith.constant 0 : index
    %c0_2 = arith.constant 0 : index
    %1 = vector.load %arg3[%c0_1, %c0_2] : memref<16x1024xf32, #tpu.memory_space<vmem>>, vector<16x1024xf32>
    tpu.vector_store %arg3[%c0_1, %c0_2], %0 {strides = array<i32>} : memref<16x1024xf32, #tpu.memory_space<vmem>>, vector<16x1024xf32>,
    return
  }
  func.func @transform_0(%arg0: i32, %arg1: i32) -> (i32, i32) {
    %c0_i32 = arith.constant 0 : i32
    return %arg0, %arg1 : i32, i32
  }
  func.func @transform_1(%arg0: i32, %arg1: i32) -> (i32, i32) {
    %c0_i32 = arith.constant 0 : i32
    return %arg0, %arg1 : i32, i32
  }
}

</mosaic_0001>

<bundles_post_ra>
// kernel: tpu_custom_call.1
= control target key start
LH: loop header
LB: loop body
LE: loop exit
PB: predicated region body
PF: predicated region fallthrough
CT: control target
= control target key end

     0   :  { %6 = vsyncpa [#allocation3], 0  ;;  %s146_s0 = inlined_call_operand.hbm [shape: f32[16,1024], index: 0, kind: input, shape index: {}]   ;;  %s147_s1 = inlined_call_operand.hbm [shape: f32[16,1024], index: 1, kind: output, shape index: {}]  }
   0x1   :  { %7 = vsyncpa [#allocation4], 0  ;;  %s120_s6 = smov [#allocation2]  }
   0x2   :  { %s13_s7 = sshll.u32 %s120_s6, 4  ;;  %s14_s7 = int_to_ptr.vmem [resolvable:$true] %s13_s7 }
   0x3   :  { %s84_s8 = scalar_lea.vmem %s14_s7, 2048  ;;  %p89_p1 = scmp.lt.s32.totalorder %s14_s7, %s14_s7 }
   0x4   :  { %p85_p0 = scmp.ne.s32.totalorder %s14_s7, %s84_s8  ;;  %p90_p2 = scmp.lt.s32.totalorder %s84_s8, %s84_s8 }
   0x6   :  { %p91_p3 = por %p90_p2, %p89_p1 }
   0x8   :  { %p92_p4 = pnand %p91_p3, %p85_p0 }
   0xa   :  { %95 = shalt.err (!%p92_p4)
}
   0xb   :  { %s121_s9 = smov 1024   ;;  %s122_s10 = smov 64  }
   0xc   :  { %19 = dma.hbm_to_vmem [thread:$0]  %s146_s0, 2048, %s14_s7, [#allocation3], %s121_s9, %s121_s9, %s122_s10  }
   0xd   :  { %116 = dma.done.wait [#allocation3], 2048  }
   0xe   :  { %117 = vsyncadd [#allocation3], 4294965248  ;;  %v23_v0 = vld [vmem:[#allocation2] sm:$0xff]  ;;  %v24_v1 = vld [vmem:[#allocation2 + $0x8] sm:$0xff]  ;;  %s123_s13 = smov [#allocation5]  }
   0xf   :  { %v25_v2 = vld [vmem:[#allocation2 + $0x10] sm:$0xff]  ;;  %39 = vst [vmem:[#allocation5] sm:$0xff] %v23_v0  ;;  %40 = vst [vmem:[#allocation5 + $0x8] sm:$0xff] %v24_v1  ;;  %v26_v3 = vld [vmem:[#allocation2 + $0x18] sm:$0xff]  ;;  %s60_s14 = sshll.u32 %s123_s13, 4  ;;  %s61_s14 = int_to_ptr.vmem [resolvable:$true] %s60_s14 }
  0x10   :  { %41 = vst [vmem:[#allocation5 + $0x10] sm:$0xff] %v25_v2  ;;  %v27_v4 = vld [vmem:[#allocation2 + $0x20] sm:$0xff]  ;;  %v28_v5 = vld [vmem:[#allocation2 + $0x28] sm:$0xff]  ;;  %42 = vst [vmem:[#allocation5 + $0x18] sm:$0xff] %v26_v3  ;;  %s96_s0 = scalar_lea.vmem %s61_s14, 2048  ;;  %p101_p6 = scmp.lt.s32.totalorder %s61_s14, %s61_s14 }
  0x11   :  { %43 = vst [vmem:[#allocation5 + $0x20] sm:$0xff] %v27_v4  ;;  %44 = vst [vmem:[#allocation5 + $0x28] sm:$0xff] %v28_v5  ;;  %v29_v6 = vld [vmem:[#allocation2 + $0x30] sm:$0xff]  ;;  %v30_v7 = vld [vmem:[#allocation2 + $0x38] sm:$0xff]  ;;  %p97_p5 = scmp.ne.s32.totalorder %s61_s14, %s96_s0  ;;  %p102_p7 = scmp.lt.s32.totalorder %s96_s0, %s96_s0 }
  0x12   :  { %v31_v8 = vld [vmem:[#allocation2 + $0x40] sm:$0xff]  ;;  %45 = vst [vmem:[#allocation5 + $0x30] sm:$0xff] %v29_v6  ;;  %46 = vst [vmem:[#allocation5 + $0x38] sm:$0xff] %v30_v7  ;;  %v32_v9 = vld [vmem:[#allocation2 + $0x48] sm:$0xff] }
  0x13   :  { %47 = vst [vmem:[#allocation5 + $0x40] sm:$0xff] %v31_v8  ;;  %v33_v10 = vld [vmem:[#allocation2 + $0x50] sm:$0xff]  ;;  %v34_v11 = vld [vmem:[#allocation2 + $0x58] sm:$0xff]  ;;  %48 = vst [vmem:[#allocation5 + $0x48] sm:$0xff] %v32_v9  ;;  %p103_p8 = por %p102_p7, %p101_p6 }
  0x14   :  { %49 = vst [vmem:[#allocation5 + $0x50] sm:$0xff] %v33_v10  ;;  %50 = vst [vmem:[#allocation5 + $0x58] sm:$0xff] %v34_v11  ;;  %v35_v12 = vld [vmem:[#allocation2 + $0x60] sm:$0xff]  ;;  %v36_v13 = vld [vmem:[#allocation2 + $0x68] sm:$0xff] }
  0x15   :  { %v37_v14 = vld [vmem:[#allocation2 + $0x70] sm:$0xff]  ;;  %51 = vst [vmem:[#allocation5 + $0x60] sm:$0xff] %v35_v12  ;;  %52 = vst [vmem:[#allocation5 + $0x68] sm:$0xff] %v36_v13  ;;  %v38_v15 = vld [vmem:[#allocation2 + $0x78] sm:$0xff]  ;;  %p104_p9 = pnand %p103_p8, %p97_p5 }
  0x16   :  { %53 = vst [vmem:[#allocation5 + $0x70] sm:$0xff] %v37_v14  ;;  %54 = vst [vmem:[#allocation5 + $0x78] sm:$0xff] %v38_v15 }
  0x17   :  { %107 = shalt.err (!%p104_p9)
}
  0x18   :  { %66 = dma.vmem_to_hbm [thread:$0]  %s61_s14, 2048, %s147_s1, [#allocation4], %s121_s9, %s121_s9, %s122_s10  }
  0x19   :  { %118 = dma.done.wait [#allocation4], 2048  }
  0x1a   :  { %119 = vsyncadd [#allocation4], 4294965248 }
  0x1b   :  { %70 = vsyncpa [#allocation3], 1 }
  0x1c   :  { %71 = vsyncpa [#allocation4], 1 }

</bundles_post_ra>
